<compile_context>
chip_gen: v7x
topology: tpu7x:2x2x1
jax: 0.10.0
libtpu: 0.0.40
codegen_flags: <defaults>
</compile_context>

<pallas_src>
import functools

import jax
import jax.numpy as jnp
from jax.experimental import pallas as pl
from jax.experimental.pallas import tpu as pltpu

# ---------------------------------------------------------------------------
# Static embedding-net configuration (synthetic net_obj).
# ---------------------------------------------------------------------------
C_IN, F_CONV, E_OUT, KH, KW = 4, 8, 32, 3, 3
K_RAW = C_IN * KH * KW          # 36 im2col features
K_AUG = K_RAW + 1               # +1 ones column carrying the folded conv bias
K_PAD = 40                      # sublane-aligned (8) conv contraction width
E_PAD = 128                     # lane-dense padded hidden / embedding width


# ---------------------------------------------------------------------------
# Pallas kernel: conv (patch matmul, bias folded) + ReLU -> in-kernel pooling
# matmul -> FC matmul + bias, for both branches at once (batch-concatenated).
# ---------------------------------------------------------------------------
def _fused_branches_kernel(patches_ref, wslab_ref, bfc_ref, out_ref, *,
                           n_imgs, hw):
    # patches: (n_imgs*hw, K_PAD) bf16
    # wslab:   (K_PAD + E_PAD, E_PAD) bf16  rows [0:K_PAD)   = conv weight+bias
    #                                       rows [K_PAD:...) = fc weight
    # bfc:     (1, E_PAD) f32
    # out:     (n_imgs, E_PAD) f32
    w_conv = wslab_ref[:K_PAD, :]          # static, sublane-aligned VMEM views
    w_fc = wslab_ref[K_PAD:, :]

    # Conv as patch matmul on the MXU; folded bias rides on the ones column.
    conv = jnp.dot(patches_ref[...], w_conv,
                   preferred_element_type=jnp.float32)             # (rows, E_PAD)
    conv = jnp.maximum(conv, 0.0)

    # Global average pool as an MXU matmul against an in-kernel block-diagonal
    # 0/1 mask (row belongs to image i  <=>  i*hw <= row < (i+1)*hw).
    rows = n_imgs * hw
    r = jax.lax.broadcasted_iota(jnp.int32, (n_imgs, rows), 1)
    i = jax.lax.broadcasted_iota(jnp.int32, (n_imgs, rows), 0)
    mask = ((r >= i * hw) & (r < (i + 1) * hw)).astype(jnp.bfloat16)
    pooled = jnp.dot(mask, conv.astype(jnp.bfloat16),
                     preferred_element_type=jnp.float32) * (1.0 / hw)  # (n_imgs, E_PAD)

    emb = jnp.dot(pooled.astype(jnp.bfloat16), w_fc,
                  preferred_element_type=jnp.float32)              # (n_imgs, E_PAD)
    out_ref[...] = emb + bfc_ref[...]


# ---------------------------------------------------------------------------
# Plain-JAX glue (fuses under jit): NCHW -> (N*H*W, C*KH*KW) patch matrix.
# Patch feature order is (c, kh, kw), matching PyTorch weight.reshape(F, C*9).
# ---------------------------------------------------------------------------
def _im2col_nchw(x, kh=KH, kw=KW, pad=1):
    n, c, h, w = x.shape
    x_pad = jnp.pad(x, ((0, 0), (0, 0), (pad, pad), (pad, pad)))
    cols = []
    for i in range(kh):
        for j in range(kw):
            cols.append(x_pad[:, :, i:i + h, j:j + w])    # (N, C, H, W)
    patches = jnp.stack(cols, axis=2)                     # (N, C, KH*KW, H, W)
    patches = patches.transpose(0, 3, 4, 1, 2)            # (N, H, W, C, KH*KW)
    return patches.reshape(n * h * w, c * kh * kw)


# ---------------------------------------------------------------------------
# Fused two-branch forward: one pallas_call for both x1 and x2.
# ---------------------------------------------------------------------------
def _triplet_net_2_branch_impl(x1, x2, w_slab, b_fc_pad):
    assert x1.shape == x2.shape, "both branches must see identically-shaped inputs"
    n1 = x1.shape[0]
    # Cast to bf16 BEFORE im2col: halves im2col glue bytes + the patches DMA.
    x = jnp.concatenate([x1, x2], axis=0).astype(jnp.bfloat16)     # (2N, C, H, W)
    n, _, h, w = x.shape
    hw = h * w
    rows = n * hw

    patches = _im2col_nchw(x)                                      # (rows, 36) bf16
    patches = jnp.concatenate(
        [patches,
         jnp.ones((rows, 1), jnp.bfloat16),                        # folded conv bias
         jnp.zeros((rows, K_PAD - K_AUG), jnp.bfloat16)],          # align K to 40
        axis=1)                                                    # (rows, K_PAD)

    kernel = functools.partial(_fused_branches_kernel, n_imgs=n, hw=hw)
    vmem = pl.BlockSpec(memory_space=pltpu.MemorySpace.VMEM)
    out = pl.pallas_call(
        kernel,
        out_shape=jax.ShapeDtypeStruct((n, E_PAD), jnp.float32),
        in_specs=[vmem, vmem, vmem],
        out_specs=vmem,
    )(patches, w_slab, b_fc_pad)

    emb = out[:, :E_OUT]                                           # (2N, E)
    return emb[:n1], emb[n1:]


triplet_net_2_branch = jax.jit(_triplet_net_2_branch_impl)


# ---------------------------------------------------------------------------
# Deterministic parameter construction (synthetic net_obj) + one-time packing.
# ---------------------------------------------------------------------------
def make_params():
    key = jax.random.PRNGKey(42)
    k1, k2, k3, k4 = jax.random.split(key, 4)
    w_conv = jax.random.normal(k1, (F_CONV, C_IN, KH, KW), jnp.float32) * 0.1
    b_conv = jax.random.normal(k2, (F_CONV,), jnp.float32) * 0.01
    w_fc = jax.random.normal(k3, (F_CONV, E_OUT), jnp.float32) * 0.1
    b_fc = jax.random.normal(k4, (E_OUT,), jnp.float32) * 0.01
    return w_conv, b_conv, w_fc, b_fc


def pack_params(w_conv, b_conv, w_fc, b_fc):
    """One-time, outside jit: fold conv bias, lane-pad, pack into one bf16 slab."""
    assert E_OUT <= E_PAD and K_AUG <= K_PAD
    w_conv_mat = w_conv.reshape(F_CONV, K_RAW).T                    # (36, F)
    w_conv_aug = jnp.concatenate([w_conv_mat, b_conv[None, :]], 0)  # (37, F)
    conv_blk = (jnp.zeros((K_PAD, E_PAD), jnp.float32)
                .at[:K_AUG, :F_CONV].set(w_conv_aug))               # (K_PAD, 128)
    fc_blk = (jnp.zeros((E_PAD, E_PAD), jnp.float32)
              .at[:F_CONV, :E_OUT].set(w_fc))                       # (128, 128)
    w_slab = jnp.concatenate([conv_blk, fc_blk], axis=0).astype(jnp.bfloat16)
    b_fc_pad = jnp.zeros((1, E_PAD), jnp.float32).at[0, :E_OUT].set(b_fc)
    return w_slab, b_fc_pad


# ---------------------------------------------------------------------------
# Pure-JAX f32 reference (single branch) for sanity checking.
# ---------------------------------------------------------------------------
def _ref_branch(x, w_conv, b_conv, w_fc, b_fc):
    patches = _im2col_nchw(x.astype(jnp.float32))
    conv = jnp.maximum(patches @ w_conv.reshape(F_CONV, K_RAW).T + b_conv[None, :], 0.0)
    n = x.shape[0]
    pooled = conv.reshape(n, -1, F_CONV).mean(axis=1)
    return pooled @ w_fc + b_fc[None, :]


if __name__ == "__main__":
    key = jax.random.PRNGKey(0)
    kx1, kx2 = jax.random.split(key)
    # NCHW inputs, matching PyTorch convention: batch=2, channels=4, 16x16
    x1 = jax.random.normal(kx1, (2, 4, 16, 16), jnp.float32)
    x2 = jax.random.normal(kx2, (2, 4, 16, 16), jnp.float32)

    raw = make_params()
    w_slab, b_fc_pad = pack_params(*raw)      # one-time, hoisted out of the call path

    emb1, emb2 = triplet_net_2_branch(x1, x2, w_slab, b_fc_pad)
    emb1 = jax.block_until_ready(emb1)
    emb2 = jax.block_until_ready(emb2)

    # Correctness vs pure-JAX f32 reference (bf16 MXU operands -> looser tol).
    ref1 = _ref_branch(x1, *raw)
    ref2 = _ref_branch(x2, *raw)
    assert emb1.shape == (2, E_OUT) and emb2.shape == (2, E_OUT)
    assert jnp.allclose(emb1, ref1, atol=3e-2, rtol=3e-2)
    assert jnp.allclose(emb2, ref2, atol=3e-2, rtol=3e-2)

    print("KERNEL_OK")
</pallas_src>

<mosaic_0001>
module attributes {stable_mosaic.version = 11 : i64} {
  func.func @_fused_branches_kernel(%arg0: memref<1024x40xbf16, #tpu.memory_space<vmem>>, %arg1: memref<168x128xbf16, #tpu.memory_space<vmem>>, %arg2: memref<1x128xf32, #tpu.memory_space<vmem>>, %arg3: memref<4x128xf32, #tpu.memory_space<vmem>>) attributes {dimension_semantics = [], scalar_prefetch = 0 : i64, scratch_operands = 0 : i64, tpu.core_type = #tpu.core_type<tc>} {
    %c0 = arith.constant 0 : index
    %c0_0 = arith.constant 0 : index
    %0 = vector.load %arg1[%c0, %c0_0] : memref<168x128xbf16, #tpu.memory_space<vmem>>, vector<40x128xbf16>
    %c40 = arith.constant 40 : index
    %c0_1 = arith.constant 0 : index
    %1 = vector.load %arg1[%c40, %c0_1] : memref<168x128xbf16, #tpu.memory_space<vmem>>, vector<128x128xbf16>
    %c0_2 = arith.constant 0 : index
    %c0_3 = arith.constant 0 : index
    %2 = vector.load %arg0[%c0_2, %c0_3] : memref<1024x40xbf16, #tpu.memory_space<vmem>>, vector<1024x40xbf16>
    %cst = arith.constant dense<0.000000e+00> : vector<1024x128xf32>
    %3 = tpu.matmul %2, %0, %cst {dimension_numbers = #tpu.dot_dimension_numbers<[1], [0], [0], [1], [0, 0, 1, 1], [], []>} : vector<1024x40xbf16>, vector<40x128xbf16>, vector<1024x128xf32> -> vector<1024x128xf32>
    %cst_4 = arith.constant 0.000000e+00 : f32
    %4 = vector.broadcast %cst_4 : f32 to vector<1024x128xf32>
    %5 = arith.maximumf %3, %4 : vector<1024x128xf32>
    %6 = tpu.iota {dimensions = array<i32: 1>} : vector<4x1024xi32>
    %7 = tpu.iota {dimensions = array<i32: 0>} : vector<4x1024xi32>
    %c256_i32 = arith.constant 256 : i32
    %8 = vector.broadcast %c256_i32 : i32 to vector<4x1024xi32>
    %9 = arith.muli %7, %8 : vector<4x1024xi32>
    %10 = arith.cmpi sge, %6, %9 : vector<4x1024xi32>
    %c1_i32 = arith.constant 1 : i32
    %11 = vector.broadcast %c1_i32 : i32 to vector<4x1024xi32>
    %12 = arith.addi %7, %11 : vector<4x1024xi32>
    %c256_i32_5 = arith.constant 256 : i32
    %13 = vector.broadcast %c256_i32_5 : i32 to vector<4x1024xi32>
    %14 = arith.muli %12, %13 : vector<4x1024xi32>
    %15 = arith.cmpi slt, %6, %14 : vector<4x1024xi32>
    %16 = arith.andi %10, %15 : vector<4x1024xi1>
    %17 = arith.extui %16 : vector<4x1024xi1> to vector<4x1024xi32>
    %18 = arith.sitofp %17 : vector<4x1024xi32> to vector<4x1024xf32>
    %19 = arith.truncf %18 : vector<4x1024xf32> to vector<4x1024xbf16>
    %20 = arith.truncf %5 : vector<1024x128xf32> to vector<1024x128xbf16>
    %cst_6 = arith.constant dense<0.000000e+00> : vector<4x128xf32>
    %21 = tpu.matmul %19, %20, %cst_6 {dimension_numbers = #tpu.dot_dimension_numbers<[1], [0], [0], [1], [0, 0, 1, 1], [], []>} : vector<4x1024xbf16>, vector<1024x128xbf16>, vector<4x128xf32> -> vector<4x128xf32>
    %cst_7 = arith.constant 3.906250e-03 : f32
    %22 = vector.broadcast %cst_7 : f32 to vector<4x128xf32>
    %23 = arith.mulf %21, %22 : vector<4x128xf32>
    %24 = arith.truncf %23 : vector<4x128xf32> to vector<4x128xbf16>
    %cst_8 = arith.constant dense<0.000000e+00> : vector<4x128xf32>
    %25 = tpu.matmul %24, %1, %cst_8 {dimension_numbers = #tpu.dot_dimension_numbers<[1], [0], [0], [1], [0, 0, 1, 1], [], []>} : vector<4x128xbf16>, vector<128x128xbf16>, vector<4x128xf32> -> vector<4x128xf32>
    %c0_9 = arith.constant 0 : index
    %c0_10 = arith.constant 0 : index
    %26 = vector.load %arg2[%c0_9, %c0_10] : memref<1x128xf32, #tpu.memory_space<vmem>>, vector<1x128xf32>
    %27 = vector.broadcast %26 : vector<1x128xf32> to vector<4x128xf32>
    %28 = arith.addf %25, %27 : vector<4x128xf32>
    %c0_11 = arith.constant 0 : index
    %c0_12 = arith.constant 0 : index
    %29 = vector.load %arg3[%c0_11, %c0_12] : memref<4x128xf32, #tpu.memory_space<vmem>>, vector<4x128xf32>
    tpu.vector_store %arg3[%c0_11, %c0_12], %28 {strides = array<i32>} : memref<4x128xf32, #tpu.memory_space<vmem>>, vector<4x128xf32>,
    return
  }
}

</mosaic_0001>

<bundles_post_ra>
// kernel: _triplet_net_2_branch_impl.1
= control target key start
LH: loop header
LB: loop body
LE: loop exit
PB: predicated region body
PF: predicated region fallthrough
CT: control target
= control target key end

     0   :  { %vm499_vm0 = vcmask 326656   ;;  %vm692_vm1 = vcmask 1043456   ;;  %s2786_s1 = inlined_call_operand.vmem [shape: bf16[168,128], index: 1, kind: input, shape index: {}]   ;;  %s2787_s0 = inlined_call_operand.vmem [shape: bf16[1024,40], index: 0, kind: input, shape index: {}]   ;;  %s2788_s2 = inlined_call_operand.vmem [shape: f32[1,128], index: 2, kind: input, shape index: {}]   ;;  %s2789_s3 = inlined_call_operand.vmem [shape: f32[4,128], index: 3, kind: output, shape index: {}]  }
   0x1   :  { %v2250_v0 = vld [vmem:[%s2786_s1] sm:$0xff]   ;;  %v2251_v1 = vld [vmem:[%s2786_s1 + $0x8] sm:$0xff]   ;;  %v2252_v3 = vld [vmem:[%s2786_s1 + $0x10] ss:$0 sps:$4 sm:$0xff]  }
   0x2   :  { %2085 = vmatprep.subr.bf16.mxu0 %v2250_v0  ;;  %2239 = vmatprep.subr.bf16.mxu1 %v2250_v0  ;;  %v2253_v2 = vld [vmem:[%s2787_s0] sm:$0xff]   ;;  %v694_v4 = vsel %vm692_vm1, %v2252_v3, 0  ;;  %v2254_v5 = vld [vmem:[%s2787_s0 + $0x8] sm:$0xff]   ;;  %v2255_v6 = vld [vmem:[%s2787_s0 + $0x10] sm:$0xff]  }
   0x3   :  { %2086 = vmatpush3.bf16.msra.mxu0 %v2250_v0  ;;  %2242 = vmatpush3.bf16.msra.mxu1 %v2250_v0  ;;  %v2256_v7 = vld [vmem:[%s2787_s0 + $0x18] sm:$0xff]   ;;  %v2257_v8 = vld [vmem:[%s2787_s0 + $0x20] sm:$0xff]   ;;  %v2258_v9 = vld [vmem:[%s2787_s0 + $0x28] sm:$0xff]  }
   0x4   :  { %2087 = vmatprep.subr.bf16.mxu0 %v2251_v1  ;;  %2240 = vmatprep.subr.bf16.mxu1 %v2251_v1  ;;  %v2259_v10 = vld [vmem:[%s2787_s0 + $0x30] sm:$0xff]   ;;  %v2260_v11 = vld [vmem:[%s2787_s0 + $0x38] sm:$0xff]   ;;  %v2261_v12 = vld [vmem:[%s2787_s0 + $0x40] sm:$0xff]  }
   0x5   :  { %2091 = vmatprep.mubr.msk.bf16.mxu0 %vm499_vm0, %v2253_v2  ;;  %v2262_v13 = vld [vmem:[%s2787_s0 + $0x48] sm:$0xff]   ;;  %v2263_v14 = vld [vmem:[%s2787_s0 + $0x50] sm:$0xff]   ;;  %v2296_v16 = vld [vmem:[%s2787_s0 + $0x198] sm:$0xff]  }
   0x6   :  { %v2295_v15 = vld [vmem:[%s2787_s0 + $0x190] sm:$0xff]   ;;  %v2264_v17 = vld [vmem:[%s2787_s0 + $0x58] sm:$0xff]   ;;  %v2265_v18 = vld [vmem:[%s2787_s0 + $0x60] sm:$0xff]  }
   0x7   :  { %2088 = vmatpush3.bf16.msra.mxu0 %v2251_v1  ;;  %2243 = vmatpush3.bf16.msra.mxu1 %v2251_v1  ;;  %v2299_v19 = vld [vmem:[%s2787_s0 + $0x1a0] sm:$0xff]   ;;  %v2300_v20 = vld [vmem:[%s2787_s0 + $0x1a8] sm:$0xff]   ;;  %v2267_v22 = vld [vmem:[%s2787_s0 + $0x70] sm:$0xff]   ;;  %v1369_v1 = vlaneseq }
   0x8   :  { %2245 = vmatprep.subr.msk.bf16.mxu0 %vm692_vm1, %v2252_v3  ;;  %2246 = vmatprep.subr.msk.bf16.mxu1 %vm692_vm1, %v2252_v3  ;;  %v2266_v21 = vld [vmem:[%s2787_s0 + $0x68] sm:$0xff]   ;;  %v2303_v23 = vld [vmem:[%s2787_s0 + $0x1b0] sm:$0xff]   ;;  %v2304_v24 = vld [vmem:[%s2787_s0 + $0x1b8] sm:$0xff]  }
   0x9   :  { %2191 = vmatprep.mubr.msk.bf16.mxu1 %vm499_vm0, %v2295_v15  ;;  %v2268_v25 = vld [vmem:[%s2787_s0 + $0x78] sm:$0xff]   ;;  %v2269_v26 = vld [vmem:[%s2787_s0 + $0x80] sm:$0xff]   ;;  %v2308_v28 = vld [vmem:[%s2787_s0 + $0x1c8] sm:$0xff]   ;;  %v1379_v2 = vshrl.u32 %v1369_v1, 7 }
   0xa   :  { %v2307_v27 = vld [vmem:[%s2787_s0 + $0x1c0] sm:$0xff]   ;;  %v2270_v29 = vld [vmem:[%s2787_s0 + $0x88] sm:$0xff]   ;;  %v2271_v30 = vld [vmem:[%s2787_s0 + $0x90] sm:$0xff]  }
   0xb   :  { %2090 = vmatpush3.bf16.msra.mxu0 %v694_v4  ;;  %2244 = vmatpush3.bf16.msra.mxu1 %v694_v4  ;;  %v2311_v31 = vld [vmem:[%s2787_s0 + $0x1d0] sm:$0xff]   ;;  %v2312_v32 = vld [vmem:[%s2787_s0 + $0x1d8] sm:$0xff]   ;;  %v2313_v33 = vld [vmem:[%s2787_s0 + $0x1e0] sm:$0xff]   ;;  %v2604_v4 = vand.u32 127, %v1369_v1 }
   0xc   :  { %v2272_v34 = vld [vmem:[%s2787_s0 + $0x98] sm:$0xff]   ;;  %v2273_v35 = vld [vmem:[%s2787_s0 + $0xa0] sm:$0xff]   ;;  %v2314_v36 = vld [vmem:[%s2787_s0 + $0x1e8] sm:$0xff]  }
   0xd   :  { %v2274_v37 = vld [vmem:[%s2787_s0 + $0xa8] sm:$0xff]   ;;  %v2275_v38 = vld [vmem:[%s2787_s0 + $0xb0] sm:$0xff]   ;;  %v2316_v40 = vld [vmem:[%s2787_s0 + $0x1f8] sm:$0xff]  }
   0xe   :  { %2092 = vmatmul.mubr.msk.bf16.vlgmr.msra.gmra.mrb[0].mxu0 %vm499_vm0, %v2254_v5  ;;  %2192 = vmatmul.mubr.msk.bf16.vlgmr.msra.gmra.mrb[0].mxu1 %vm499_vm0, %v2296_v16  ;;  %v2315_v39 = vld [vmem:[%s2787_s0 + $0x1f0] sm:$0xff]   ;;  %v2276_v41 = vld [vmem:[%s2787_s0 + $0xb8] sm:$0xff]   ;;  %v2277_v42 = vld [vmem:[%s2787_s0 + $0xc0] sm:$0xff]   ;;  %v1389_v5 = vadd.s32 1, %v1379_v2 }
   0xf   :  { %2095 = vmatprep.mubr.msk.bf16.mxu0 %vm499_vm0, %v2255_v6  ;;  %2195 = vmatprep.mubr.msk.bf16.mxu1 %vm499_vm0, %v2299_v19  ;;  %v2278_v43 = vld [vmem:[%s2787_s0 + $0xc8] sm:$0xff]   ;;  %v2279_v44 = vld [vmem:[%s2787_s0 + $0xd0] sm:$0xff]   ;;  %v2280_v45 = vld [vmem:[%s2787_s0 + $0xd8] sm:$0xff]  }
  0x10   :  { %v2281_v46 = vld [vmem:[%s2787_s0 + $0xe0] sm:$0xff]   ;;  %v2282_v47 = vld [vmem:[%s2787_s0 + $0xe8] sm:$0xff]   ;;  %v2283_v48 = vld [vmem:[%s2787_s0 + $0xf0] sm:$0xff]  }
  0x11   :  { %v2284_v49 = vld [vmem:[%s2787_s0 + $0xf8] sm:$0xff]   ;;  %v2285_v50 = vld [vmem:[%s2787_s0 + $0x100] sm:$0xff]   ;;  %v2286_v51 = vld [vmem:[%s2787_s0 + $0x108] sm:$0xff]  }
  0x12   :  { %v2287_v52 = vld [vmem:[%s2787_s0 + $0x110] sm:$0xff]   ;;  %v2288_v53 = vld [vmem:[%s2787_s0 + $0x118] sm:$0xff]   ;;  %v2289_v54 = vld [vmem:[%s2787_s0 + $0x120] sm:$0xff]  }
  0x13   :  { %v2290_v55 = vld [vmem:[%s2787_s0 + $0x128] sm:$0xff]   ;;  %v2291_v56 = vld [vmem:[%s2787_s0 + $0x130] sm:$0xff]   ;;  %v2292_v57 = vld [vmem:[%s2787_s0 + $0x138] sm:$0xff]  }
  0x14   :  { %v2293_v58 = vld [vmem:[%s2787_s0 + $0x140] sm:$0xff]   ;;  %v2294_v59 = vld [vmem:[%s2787_s0 + $0x148] sm:$0xff]   ;;  %v2297_v60 = vld [vmem:[%s2787_s0 + $0x150] sm:$0xff]  }
  0x15   :  { %v2298_v61 = vld [vmem:[%s2787_s0 + $0x158] sm:$0xff]   ;;  %v2301_v62 = vld [vmem:[%s2787_s0 + $0x160] sm:$0xff]   ;;  %v2302_v63 = vld [vmem:[%s2787_s0 + $0x168] sm:$0xff]  }
  0x16   :  { %2096 = vmatmul.mubr.msk.bf16.gmra.mrb[4].mxu0 %vm499_vm0, %v2256_v7  ;;  %2196 = vmatmul.mubr.msk.bf16.gmra.mrb[4].mxu1 %vm499_vm0, %v2300_v20  ;;  %v2305_v0 = vld [vmem:[%s2787_s0 + $0x170] sm:$0xff]   ;;  %v2306_v3 = vld [vmem:[%s2787_s0 + $0x178] sm:$0xff]   ;;  %v2309_v6 = vld [vmem:[%s2787_s0 + $0x180] sm:$0xff]   ;;  %v1371_v7 = vadd.s32 128, %v2604_v4 }
  0x17   :  { %2099 = vmatprep.mubr.msk.bf16.mxu0 %vm499_vm0, %v2257_v8  ;;  %2199 = vmatprep.mubr.msk.bf16.mxu1 %vm499_vm0, %v2303_v23  ;;  %v2610_v8 = vmul.u32 256, %v1379_v2 }
  0x19   :  { %vm1382_vm2 = vcmp.ge.s32.totalorder %v1371_v7, %v2610_v8  ;;  %vm1381_vm6 = vcmp.ge.s32.totalorder %v2604_v4, %v2610_v8 }
  0x1e   :  { %2100 = vmatmul.mubr.msk.bf16.gmra.mrb[8].mxu0 %vm499_vm0, %v2258_v9  ;;  %2200 = vmatmul.mubr.msk.bf16.gmra.mrb[8].mxu1 %vm499_vm0, %v2304_v24  ;;  %v2612_v9 = vmul.u32 256, %v1389_v5 }
  0x1f   :  { %2103 = vmatprep.mubr.msk.bf16.mxu0 %vm499_vm0, %v2259_v10  ;;  %2203 = vmatprep.mubr.msk.bf16.mxu1 %vm499_vm0, %v2307_v27  ;;  %v2325_v10 = vmov 1.0|1.0  }
  0x20   :  { %vm1392_vm3 = vcmp.lt.s32.totalorder %v1371_v7, %v2612_v9  ;;  %vm1391_vm7 = vcmp.lt.s32.totalorder %v2604_v4, %v2612_v9 }
  0x21   :  { %vm1400_vm4 = vmand %vm1382_vm2, %vm1392_vm3 }
  0x22   :  { %vm1896_vm5 = vmpackc.low %vm1400_vm4, %vm1400_vm4 }
  0x23   :  { %vm2665_vm10 = vmand %vm1381_vm6, %vm1391_vm7 }
  0x24   :  { %vm1898_vm12 = vmpackc.low %vm2665_vm10, %vm2665_vm10 }
  0x26   :  { %2104 = vmatmul.mubr.msk.bf16.gmra.mrb[12].mxu0 %vm499_vm0, %v2260_v11  ;;  %2204 = vmatmul.mubr.msk.bf16.gmra.mrb[12].mxu1 %vm499_vm0, %v2308_v28  ;;  %v2310_v11 = vld [vmem:[%s2787_s0 + $0x188] sm:$0xff]  }
  0x27   :  { %2107 = vmatprep.mubr.msk.bf16.mxu0 %vm499_vm0, %v2261_v12  ;;  %2207 = vmatprep.mubr.msk.bf16.mxu1 %vm499_vm0, %v2311_v31 }
  0x2e   :  { %2108 = vmatmul.mubr.msk.bf16.gmra.mrb[16].mxu0 %vm499_vm0, %v2262_v13  ;;  %2208 = vmatmul.mubr.msk.bf16.gmra.mrb[16].mxu1 %vm499_vm0, %v2312_v32 }
  0x2f   :  { %2111 = vmatprep.mubr.msk.bf16.mxu0 %vm499_vm0, %v2263_v14  ;;  %2211 = vmatprep.mubr.msk.bf16.mxu1 %vm499_vm0, %v2313_v33 }
  0x36   :  { %2112 = vmatmul.mubr.msk.bf16.gmra.mrb[20].mxu0 %vm499_vm0, %v2264_v17  ;;  %2212 = vmatmul.mubr.msk.bf16.gmra.mrb[20].mxu1 %vm499_vm0, %v2314_v36 }
  0x37   :  { %2115 = vmatprep.mubr.msk.bf16.mxu0 %vm499_vm0, %v2265_v18  ;;  %2215 = vmatprep.mubr.msk.bf16.mxu1 %vm499_vm0, %v2315_v39 }
  0x3e   :  { %2116 = vmatmul.mubr.msk.bf16.gmra.mrb[24].mxu0 %vm499_vm0, %v2266_v21  ;;  %2216 = vmatmul.mubr.msk.bf16.gmra.mrb[24].mxu1 %vm499_vm0, %v2316_v40 }
  0x3f   :  { %2119 = vmatprep.mubr.msk.bf16.mxu0 %vm499_vm0, %v2267_v22  ;;  %1897 = vmatprep.mubr.msk.bf16.mxu1 %vm1896_vm5, %v2325_v10 }
  0x46   :  { %2120 = vmatmul.mubr.msk.bf16.gmra.mrb[28].mxu0 %vm499_vm0, %v2268_v25 }
  0x47   :  { %2123 = vmatprep.mubr.msk.bf16.mxu0 %vm499_vm0, %v2269_v26 }
  0x4e   :  { %2124 = vmatmul.mubr.msk.bf16.gmra.mrb[32].mxu0 %vm499_vm0, %v2270_v29 }
  0x4f   :  { %2127 = vmatprep.mubr.msk.bf16.mxu0 %vm499_vm0, %v2271_v30 }
  0x56   :  { %2128 = vmatmul.mubr.msk.bf16.gmra.mrb[36].mxu0 %vm499_vm0, %v2272_v34 }
  0x57   :  { %2131 = vmatprep.mubr.msk.bf16.mxu0 %vm499_vm0, %v2273_v35 }
  0x5e   :  { %2132 = vmatmul.mubr.msk.bf16.gmra.mrb[40].mxu0 %vm499_vm0, %v2274_v37 }
  0x5f   :  { %2135 = vmatprep.mubr.msk.bf16.mxu0 %vm499_vm0, %v2275_v38 }
  0x66   :  { %2136 = vmatmul.mubr.msk.bf16.gmra.mrb[44].mxu0 %vm499_vm0, %v2276_v41 }
  0x67   :  { %2139 = vmatprep.mubr.msk.bf16.mxu0 %vm499_vm0, %v2277_v42 }
  0x6e   :  { %2140 = vmatmul.mubr.msk.bf16.gmra.mrb[48].mxu0 %vm499_vm0, %v2278_v43 }
  0x6f   :  { %2143 = vmatprep.mubr.msk.bf16.mxu0 %vm499_vm0, %v2279_v44 }
  0x76   :  { %2144 = vmatmul.mubr.msk.bf16.gmra.mrb[52].mxu0 %vm499_vm0, %v2280_v45 }
  0x77   :  { %2147 = vmatprep.mubr.msk.bf16.mxu0 %vm499_vm0, %v2281_v46 }
  0x7e   :  { %2148 = vmatmul.mubr.msk.bf16.gmra.mrb[56].mxu0 %vm499_vm0, %v2282_v47 }
  0x7f   :  { %2151 = vmatprep.mubr.msk.bf16.mxu0 %vm499_vm0, %v2283_v48 }
  0x86   :  { %2152 = vmatmul.mubr.msk.bf16.gmra.mrb[60].mxu0 %vm499_vm0, %v2284_v49 }
  0x87   :  { %2155 = vmatprep.mubr.msk.bf16.mxu0 %vm499_vm0, %v2285_v50 }
  0x8e   :  { %2156 = vmatmul.mubr.msk.bf16.gmra.mrb[64].mxu0 %vm499_vm0, %v2286_v51 }
  0x8f   :  { %2159 = vmatprep.mubr.msk.bf16.mxu0 %vm499_vm0, %v2287_v52 }
  0x96   :  { %2160 = vmatmul.mubr.msk.bf16.gmra.mrb[68].mxu0 %vm499_vm0, %v2288_v53 }
  0x97   :  { %2163 = vmatprep.mubr.msk.bf16.mxu0 %vm499_vm0, %v2289_v54 }
  0x9e   :  { %2164 = vmatmul.mubr.msk.bf16.gmra.mrb[72].mxu0 %vm499_vm0, %v2290_v55 }
  0x9f   :  { %2167 = vmatprep.mubr.msk.bf16.mxu0 %vm499_vm0, %v2291_v56 }
  0xa6   :  { %2168 = vmatmul.mubr.msk.bf16.gmra.mrb[76].mxu0 %vm499_vm0, %v2292_v57 }
  0xa7   :  { %2171 = vmatprep.mubr.msk.bf16.mxu0 %vm499_vm0, %v2293_v58 }
  0xae   :  { %2172 = vmatmul.mubr.msk.bf16.gmra.mrb[80].mxu0 %vm499_vm0, %v2294_v59 }
  0xaf   :  { %2175 = vmatprep.mubr.msk.bf16.mxu0 %vm499_vm0, %v2297_v60 }
  0xb6   :  { %2176 = vmatmul.mubr.msk.bf16.gmra.mrb[84].mxu0 %vm499_vm0, %v2298_v61 }
  0xb7   :  { %2179 = vmatprep.mubr.msk.bf16.mxu0 %vm499_vm0, %v2301_v62 }
  0xbe   :  { %2180 = vmatmul.mubr.msk.bf16.gmra.mrb[88].mxu0 %vm499_vm0, %v2302_v63 }
  0xbf   :  { %2183 = vmatprep.mubr.msk.bf16.mxu0 %vm499_vm0, %v2305_v0 }
  0xc6   :  { %2184 = vmatmul.mubr.msk.bf16.gmra.mrb[92].mxu0 %vm499_vm0, %v2306_v3 }
  0xc7   :  { %2187 = vmatprep.mubr.msk.bf16.mxu0 %vm499_vm0, %v2309_v6 }
  0xce   :  { %2188 = vmatmul.mubr.msk.bf16.gmra.mrb[96].mxu0 %vm499_vm0, %v2310_v11 }
  0xe1   :  { %v2093_v12 = vpop.f32.mrb[0].mxu0  ;;  %v2193_v61 = vpop.f32.mrb[0].mxu1 }
  0xe2   :  { %v730_v13 = vpop.f32.mrb[1].mxu0  ;;  %v1243_v15 = vmax.f32 %v2093_v12, 0.0  ;;  %v1343_v63 = vmax.f32 %v2193_v61, 0.0  ;;  %v1130_v0 = vpop.f32.mrb[1].mxu1 }
  0xe3   :  { %v2094_v14 = vpop.f32.mrb[2].mxu0  ;;  %v1241_v18 = vmax.f32 %v730_v13, 0.0  ;;  %v1341_v1 = vmax.f32 %v1130_v0, 0.0  ;;  %v2194_v2 = vpop.f32.mrb[2].mxu1  ;;  %v1373_v0 = vadd.s32 384, %v2604_v4 }
  0xe4   :  { %v1244_v16 = vmax.f32 %v2094_v14, 0.0  ;;  %v733_v17 = vpop.f32.mrb[3].mxu0  ;;  %v1344_v5 = vmax.f32 %v2194_v2, 0.0  ;;  %v1133_v6 = vpop.f32.mrb[3].mxu1 }
  0xe5   :  { %v1242_v19 = vmax.f32 %v733_v17, 0.0  ;;  %v1342_v11 = vmax.f32 %v1133_v6, 0.0  ;;  %vm1384_vm8 = vcmp.ge.s32.totalorder %v1373_v0, %v2610_v8  ;;  %vm1394_vm9 = vcmp.lt.s32.totalorder %v1373_v0, %v2612_v9 }
  0xe6   :  { %v2623_v20 = vpack.c.bf16 %v1244_v16, %v1243_v15  ;;  %v2637_v13 = vpack.c.bf16 %v1344_v5, %v1343_v63  ;;  %vm2671_vm11 = vmand %vm1384_vm8, %vm1394_vm9 }
  0xe7   :  { %v1431_v21 = vpack.c.bf16 %v1242_v19, %v1241_v18  ;;  %v2639_v17 = vpack.c.bf16 %v1342_v11, %v1341_v1  ;;  %vm1900_vm13 = vmpackc.low %vm2671_vm11, %vm2671_vm11 }
  0xe9   :  { %v2097_v22 = vpop.f32.mrb[4].mxu0 }
  0xea   :  { %v746_v23 = vpop.f32.mrb[5].mxu0  ;;  %v1247_v25 = vmax.f32 %v2097_v22, 0.0 }
  0xeb   :  { %v2098_v24 = vpop.f32.mrb[6].mxu0  ;;  %v1245_v28 = vmax.f32 %v746_v23, 0.0  ;;  %v2197_v23 = vpop.f32.mrb[4].mxu1 }
  0xec   :  { %v1248_v26 = vmax.f32 %v2098_v24, 0.0  ;;  %v749_v27 = vpop.f32.mrb[7].mxu0 }
  0xed   :  { %v1246_v29 = vmax.f32 %v749_v27, 0.0 }
  0xee   :  { %v2625_v30 = vpack.c.bf16 %v1248_v26, %v1247_v25  ;;  %v1347_v25 = vmax.f32 %v2197_v23, 0.0  ;;  %v1146_v26 = vpop.f32.mrb[5].mxu1 }
  0xef   :  { %v2627_v31 = vpack.c.bf16 %v1246_v29, %v1245_v28  ;;  %v2198_v27 = vpop.f32.mrb[6].mxu1 }
  0xf0   :  { %v1348_v29 = vmax.f32 %v2198_v27, 0.0 }
  0xf1   :  { %v2101_v32 = vpop.f32.mrb[8].mxu0 }
  0xf2   :  { %v762_v33 = vpop.f32.mrb[9].mxu0  ;;  %v1251_v35 = vmax.f32 %v2101_v32, 0.0  ;;  %v1149_v32 = vpop.f32.mrb[7].mxu1 }
  0xf3   :  { %v2102_v34 = vpop.f32.mrb[10].mxu0  ;;  %v1249_v38 = vmax.f32 %v762_v33, 0.0 }
  0xf4   :  { %v1252_v36 = vmax.f32 %v2102_v34, 0.0  ;;  %v765_v37 = vpop.f32.mrb[11].mxu0  ;;  %v1346_v34 = vmax.f32 %v1149_v32, 0.0 }
  0xf5   :  { %v1250_v39 = vmax.f32 %v765_v37, 0.0 }
  0xf6   :  { %v2629_v40 = vpack.c.bf16 %v1252_v36, %v1251_v35  ;;  %v2643_v36 = vpack.c.bf16 %v1348_v29, %v1347_v25 }
  0xf7   :  { %v2631_v41 = vpack.c.bf16 %v1250_v39, %v1249_v38 }
  0xf9   :  { %v2105_v42 = vpop.f32.mrb[12].mxu0 }
  0xfa   :  { %v778_v43 = vpop.f32.mrb[13].mxu0  ;;  %v1255_v45 = vmax.f32 %v2105_v42, 0.0 }
  0xfb   :  { %v2106_v44 = vpop.f32.mrb[14].mxu0  ;;  %v1253_v48 = vmax.f32 %v778_v43, 0.0 }
  0xfc   :  { %v1256_v46 = vmax.f32 %v2106_v44, 0.0  ;;  %v781_v47 = vpop.f32.mrb[15].mxu0 }
  0xfd   :  { %v1254_v49 = vmax.f32 %v781_v47, 0.0 }
  0xfe   :  { %v2633_v50 = vpack.c.bf16 %v1256_v46, %v1255_v45  ;;  %v2201_v45 = vpop.f32.mrb[8].mxu1 }
  0xff   :  { %v2635_v51 = vpack.c.bf16 %v1254_v49, %v1253_v48  ;;  %v1351_v47 = vmax.f32 %v2201_v45, 0.0  ;;  %v1162_v48 = vpop.f32.mrb[9].mxu1 }
 0x100   :  { %v2202_v49 = vpop.f32.mrb[10].mxu1 }
 0x101   :  { %v2109_v52 = vpop.f32.mrb[16].mxu0 }
 0x102   :  { %v794_v53 = vpop.f32.mrb[17].mxu0  ;;  %v1259_v55 = vmax.f32 %v2109_v52, 0.0 }
 0x103   :  { %v2110_v54 = vpop.f32.mrb[18].mxu0  ;;  %v1257_v58 = vmax.f32 %v794_v53, 0.0  ;;  %v1352_v53 = vmax.f32 %v2202_v49, 0.0 }
 0x104   :  { %v1260_v56 = vmax.f32 %v2110_v54, 0.0  ;;  %v797_v57 = vpop.f32.mrb[19].mxu0  ;;  %v1165_v54 = vpop.f32.mrb[11].mxu1 }
 0x105   :  { %v1258_v59 = vmax.f32 %v797_v57, 0.0  ;;  %v2205_v2 = vpop.f32.mrb[12].mxu1 }
 0x106   :  { %v1440_v60 = vpack.c.bf16 %v1260_v56, %v1259_v55  ;;  %v1350_v56 = vmax.f32 %v1165_v54, 0.0  ;;  %v1178_v5 = vpop.f32.mrb[13].mxu1 }
 0x107   :  { %v1439_v62 = vpack.c.bf16 %v1258_v59, %v1257_v58  ;;  %v2649_v58 = vpack.c.bf16 %v1352_v53, %v1351_v47  ;;  %v1353_v6 = vmax.f32 %v1178_v5, 0.0 }
 0x109   :  { %v2113_v3 = vpop.f32.mrb[20].mxu0  ;;  %1988 = vmatprep.subr.bf16.mxu1 %v1439_v62 }
 0x10a   :  { %v810_v7 = vpop.f32.mrb[21].mxu0  ;;  %1989 = vmatpush3.bf16.msra.mxu1 %v1431_v21  ;;  %v1263_v14 = vmax.f32 %v2113_v3, 0.0  ;;  %v1345_v21 = vmax.f32 %v1146_v26, 0.0 }
 0x10b   :  { %v2114_v12 = vpop.f32.mrb[22].mxu0  ;;  %1990 = vmatprep.subr.bf16.mxu1 %v1440_v60  ;;  %v1261_v18 = vmax.f32 %v810_v7, 0.0  ;;  %v2206_v7 = vpop.f32.mrb[14].mxu1 }
 0x10c   :  { %v1264_v15 = vmax.f32 %v2114_v12, 0.0  ;;  %v813_v16 = vpop.f32.mrb[23].mxu0  ;;  %v2645_v39 = vpack.c.bf16 %v1346_v34, %v1345_v21  ;;  %v1356_v12 = vmax.f32 %v2206_v7, 0.0 }
 0x10d   :  { %v1262_v19 = vmax.f32 %v813_v16, 0.0 }
 0x10e   :  { %v1442_v22 = vpack.c.bf16 %v1264_v15, %v1263_v14  ;;  %1991 = vmatpush3.bf16.msra.mxu1 %v2623_v20 }
 0x10f   :  { %v1441_v24 = vpack.c.bf16 %v1262_v19, %v1261_v18 }
 0x111   :  { %v2117_v28 = vpop.f32.mrb[24].mxu0  ;;  %1992 = vmatprep.subr.bf16.mxu1 %v1441_v24 }
 0x112   :  { %v826_v33 = vpop.f32.mrb[25].mxu0  ;;  %1993 = vmatpush3.bf16.msra.mxu1 %v2627_v31  ;;  %v1267_v37 = vmax.f32 %v2117_v28, 0.0  ;;  %v1349_v31 = vmax.f32 %v1162_v48, 0.0 }
 0x113   :  { %v2118_v35 = vpop.f32.mrb[26].mxu0  ;;  %1994 = vmatprep.subr.bf16.mxu1 %v1442_v22  ;;  %v1265_v42 = vmax.f32 %v826_v33, 0.0 }
 0x114   :  { %v1268_v20 = vmax.f32 %v2118_v35, 0.0  ;;  %v829_v38 = vpop.f32.mrb[27].mxu0  ;;  %v2651_v61 = vpack.c.bf16 %v1350_v56, %v1349_v31 }
 0x115   :  { %v1266_v43 = vmax.f32 %v829_v38, 0.0 }
 0x116   :  { %v1444_v44 = vpack.c.bf16 %v1268_v20, %v1267_v37  ;;  %1995 = vmatpush3.bf16.msra.mxu1 %v2625_v30 }
 0x117   :  { %v1443_v46 = vpack.c.bf16 %v1266_v43, %v1265_v42 }
 0x119   :  { %v2121_v52 = vpop.f32.mrb[28].mxu0  ;;  %1996 = vmatprep.subr.bf16.mxu1 %v1443_v46 }
 0x11a   :  { %v842_v55 = vpop.f32.mrb[29].mxu0  ;;  %1997 = vmatpush3.bf16.msra.mxu1 %v2631_v41  ;;  %v1271_v59 = vmax.f32 %v2121_v52, 0.0  ;;  %v1355_v41 = vmax.f32 %v2205_v2, 0.0 }
 0x11b   :  { %v2122_v57 = vpop.f32.mrb[30].mxu0  ;;  %1998 = vmatprep.subr.bf16.mxu1 %v1444_v44  ;;  %v1269_v62 = vmax.f32 %v842_v55, 0.0 }
 0x11c   :  { %v1272_v30 = vmax.f32 %v2122_v57, 0.0  ;;  %v845_v60 = vpop.f32.mrb[31].mxu0  ;;  %v2669_v19 = vpack.c.bf16 %v1356_v12, %v1355_v41 }
 0x11d   :  { %v1270_v63 = vmax.f32 %v845_v60, 0.0 }
 0x11e   :  { %v1446_v1 = vpack.c.bf16 %v1272_v30, %v1271_v59  ;;  %1999 = vmatpush3.bf16.msra.mxu1 %v2629_v40  ;;  %v1181_v40 = vpop.f32.mrb[15].mxu1 }
 0x11f   :  { %v1445_v3 = vpack.c.bf16 %v1270_v63, %v1269_v62  ;;  %v1354_v15 = vmax.f32 %v1181_v40, 0.0  ;;  %v2209_v28 = vpop.f32.mrb[16].mxu1 }
 0x120   :  { %v1359_v32 = vmax.f32 %v2209_v28, 0.0  ;;  %v1194_v33 = vpop.f32.mrb[17].mxu1 }
 0x121   :  { %v2125_v11 = vpop.f32.mrb[32].mxu0  ;;  %2000 = vmatprep.subr.bf16.mxu1 %v1445_v3  ;;  %v1357_v34 = vmax.f32 %v1194_v33, 0.0  ;;  %v2210_v35 = vpop.f32.mrb[18].mxu1 }
 0x122   :  { %v858_v14 = vpop.f32.mrb[33].mxu0  ;;  %2001 = vmatpush3.bf16.msra.mxu1 %v2635_v51  ;;  %v1275_v22 = vmax.f32 %v2125_v11, 0.0  ;;  %v2675_v51 = vpack.c.bf16 %v1354_v15, %v1353_v6  ;;  %v1360_v20 = vmax.f32 %v2210_v35, 0.0 }
 0x123   :  { %v2126_v16 = vpop.f32.mrb[34].mxu0  ;;  %2002 = vmatprep.subr.bf16.mxu1 %v1446_v1  ;;  %v1273_v26 = vmax.f32 %v858_v14, 0.0 }
 0x124   :  { %v1276_v23 = vmax.f32 %v2126_v16, 0.0  ;;  %v861_v24 = vpop.f32.mrb[35].mxu0  ;;  %v2690_v44 = vpack.c.bf16 %v1360_v20, %v1359_v32 }
 0x125   :  { %v1274_v21 = vmax.f32 %v861_v24, 0.0 }
 0x126   :  { %v2677_v27 = vpack.c.bf16 %v1276_v23, %v1275_v22  ;;  %2003 = vmatpush3.bf16.msra.mxu1 %v2633_v50  ;;  %v1197_v50 = vpop.f32.mrb[19].mxu1 }
 0x127   :  { %v2683_v29 = vpack.c.bf16 %v1274_v21, %v1273_v26  ;;  %v1358_v42 = vmax.f32 %v1197_v50, 0.0  ;;  %v2213_v31 = vpop.f32.mrb[20].mxu1 }
 0x128   :  { %v1363_v54 = vmax.f32 %v2213_v31, 0.0  ;;  %v1210_v55 = vpop.f32.mrb[21].mxu1 }
 0x129   :  { %v2129_v37 = vpop.f32.mrb[36].mxu0  ;;  %1899 = vmatmul.mubr.msk.bf16.vlgmr.msra.gmra.mrb[28].mxu1 %vm1898_vm12, %v2325_v10  ;;  %v2692_v48 = vpack.c.bf16 %v1358_v42, %v1357_v34  ;;  %v1361_v57 = vmax.f32 %v1210_v55, 0.0  ;;  %v2214_v59 = vpop.f32.mrb[22].mxu1 }
 0x12a   :  { %v874_v38 = vpop.f32.mrb[37].mxu0  ;;  %1901 = vmatprep.mubr.msk.bf16.mxu1 %vm1900_vm13, %v2325_v10  ;;  %v1279_v45 = vmax.f32 %v2129_v37, 0.0  ;;  %v1364_v30 = vmax.f32 %v2214_v59, 0.0  ;;  %v1213_v60 = vpop.f32.mrb[23].mxu1 }
 0x12b   :  { %v2130_v43 = vpop.f32.mrb[38].mxu0  ;;  %v1277_v49 = vmax.f32 %v874_v38, 0.0  ;;  %v1362_v63 = vmax.f32 %v1213_v60, 0.0  ;;  %v2217_v40 = vpop.f32.mrb[24].mxu1 }
 0x12c   :  { %v1280_v46 = vmax.f32 %v2130_v43, 0.0  ;;  %v877_v47 = vpop.f32.mrb[39].mxu0  ;;  %v2698_v1 = vpack.c.bf16 %v1364_v30, %v1363_v54  ;;  %v1367_v15 = vmax.f32 %v2217_v40, 0.0  ;;  %v1226_v16 = vpop.f32.mrb[25].mxu1 }
 0x12d   :  { %v1278_v52 = vmax.f32 %v877_v47, 0.0  ;;  %v2700_v3 = vpack.c.bf16 %v1362_v63, %v1361_v57  ;;  %v1365_v18 = vmax.f32 %v1226_v16, 0.0  ;;  %v2218_v22 = vpop.f32.mrb[26].mxu1 }
 0x12e   :  { %v2694_v53 = vpack.c.bf16 %v1280_v46, %v1279_v45  ;;  %v1368_v24 = vmax.f32 %v2218_v22, 0.0  ;;  %v1229_v25 = vpop.f32.mrb[27].mxu1 }
 0x12f   :  { %v2696_v56 = vpack.c.bf16 %v1278_v52, %v1277_v49  ;;  %v1366_v21 = vmax.f32 %v1229_v25, 0.0 }
 0x130   :  { %v2704_v32 = vpack.c.bf16 %v1368_v24, %v1367_v15 }
 0x131   :  { %v2133_v62 = vpop.f32.mrb[40].mxu0  ;;  %v2706_v37 = vpack.c.bf16 %v1366_v21, %v1365_v18 }
 0x132   :  { %v890_v0 = vpop.f32.mrb[41].mxu0  ;;  %v1283_v41 = vmax.f32 %v2133_v62, 0.0 }
 0x133   :  { %v2134_v2 = vpop.f32.mrb[42].mxu0  ;;  %v1281_v7 = vmax.f32 %v890_v0, 0.0 }
 0x134   :  { %v1284_v5 = vmax.f32 %v2134_v2, 0.0  ;;  %v893_v6 = vpop.f32.mrb[43].mxu0 }
 0x135   :  { %v1282_v11 = vmax.f32 %v893_v6, 0.0 }
 0x136   :  { %v2702_v12 = vpack.c.bf16 %v1284_v5, %v1283_v41 }
 0x137   :  { %v1451_v14 = vpack.c.bf16 %v1282_v11, %v1281_v7 }
 0x139   :  { %v2137_v23 = vpop.f32.mrb[44].mxu0 }
 0x13a   :  { %v906_v26 = vpop.f32.mrb[45].mxu0  ;;  %v1287_v33 = vmax.f32 %v2137_v23, 0.0 }
 0x13b   :  { %v2138_v28 = vpop.f32.mrb[46].mxu0  ;;  %v1285_v20 = vmax.f32 %v906_v26, 0.0 }
 0x13c   :  { %v1288_v34 = vmax.f32 %v2138_v28, 0.0  ;;  %v909_v35 = vpop.f32.mrb[47].mxu0 }
 0x13d   :  { %v1286_v50 = vmax.f32 %v909_v35, 0.0 }
 0x13e   :  { %v2708_v38 = vpack.c.bf16 %v1288_v34, %v1287_v33  ;;  %v1372_v33 = vadd.s32 256, %v2604_v4 }
 0x13f   :  { %v1453_v42 = vpack.c.bf16 %v1286_v50, %v1285_v20  ;;  %v1375_v20 = vadd.s32 640, %v2604_v4 }
 0x140   :  { %vm1383_vm14 = vcmp.ge.s32.totalorder %v1372_v33, %v2610_v8  ;;  %vm1393_vm15 = vcmp.lt.s32.totalorder %v1372_v33, %v2612_v9 }
 0x141   :  { %v2141_v43 = vpop.f32.mrb[48].mxu0  ;;  %vm1386_vm0 = vcmp.ge.s32.totalorder %v1375_v20, %v2610_v8  ;;  %vm1396_vm1 = vcmp.lt.s32.totalorder %v1375_v20, %v2612_v9  ;;  %vm1401_vm2 = vmand %vm1383_vm14, %vm1393_vm15 }
 0x142   :  { %v922_v45 = vpop.f32.mrb[49].mxu0  ;;  %v1291_v47 = vmax.f32 %v2141_v43, 0.0  ;;  %vm1404_vm3 = vmand %vm1386_vm0, %vm1396_vm1 }
 0x143   :  { %v2142_v46 = vpop.f32.mrb[50].mxu0  ;;  %v1289_v52 = vmax.f32 %v922_v45, 0.0  ;;  %vm1902_vm4 = vmpackc.low %vm1401_vm2, %vm1401_vm2  ;;  %vm2327_vm2 = vmmov 0  }
 0x144   :  { %v1292_v31 = vmax.f32 %v2142_v46, 0.0  ;;  %v925_v49 = vpop.f32.mrb[51].mxu0  ;;  %vm1904_vm5 = vmpackc.low %vm1404_vm3, %vm1404_vm3 }
 0x145   :  { %v1290_v54 = vmax.f32 %v925_v49, 0.0 }
 0x146   :  { %v1456_v55 = vpack.c.bf16 %v1292_v31, %v1291_v47 }
 0x147   :  { %v1455_v57 = vpack.c.bf16 %v1290_v54, %v1289_v52 }
 0x149   :  { %v2145_v59 = vpop.f32.mrb[52].mxu0  ;;  %2010 = vmatprep.subr.bf16.mxu1 %v1455_v57 }
 0x14a   :  { %v938_v30 = vpop.f32.mrb[53].mxu0  ;;  %2011 = vmatpush3.bf16.msra.mxu1 %v2683_v29  ;;  %v1295_v62 = vmax.f32 %v2145_v59, 0.0 }
 0x14b   :  { %v2146_v60 = vpop.f32.mrb[54].mxu0  ;;  %2012 = vmatprep.subr.bf16.mxu1 %v1456_v55  ;;  %v1293_v2 = vmax.f32 %v938_v30, 0.0 }
 0x14c   :  { %v1296_v63 = vmax.f32 %v2146_v60, 0.0  ;;  %v941_v0 = vpop.f32.mrb[55].mxu0 }
 0x14d   :  { %v1294_v41 = vmax.f32 %v941_v0, 0.0 }
 0x14e   :  { %v1458_v5 = vpack.c.bf16 %v1296_v63, %v1295_v62  ;;  %2013 = vmatpush3.bf16.msra.mxu1 %v2677_v27 }
 0x14f   :  { %v1457_v6 = vpack.c.bf16 %v1294_v41, %v1293_v2 }
 0x151   :  { %v2149_v7 = vpop.f32.mrb[56].mxu0  ;;  %2014 = vmatprep.subr.bf16.mxu1 %v1457_v6 }
 0x152   :  { %v954_v11 = vpop.f32.mrb[57].mxu0  ;;  %2015 = vmatpush3.bf16.msra.mxu1 %v2696_v56  ;;  %v1299_v15 = vmax.f32 %v2149_v7, 0.0 }
 0x153   :  { %v2150_v40 = vpop.f32.mrb[58].mxu0  ;;  %2016 = vmatprep.subr.bf16.mxu1 %v1458_v5  ;;  %v1297_v18 = vmax.f32 %v954_v11, 0.0 }
 0x154   :  { %v1300_v29 = vmax.f32 %v2150_v40, 0.0  ;;  %v957_v16 = vpop.f32.mrb[59].mxu0 }
 0x155   :  { %v1298_v22 = vmax.f32 %v957_v16, 0.0 }
 0x156   :  { %v1460_v23 = vpack.c.bf16 %v1300_v29, %v1299_v15  ;;  %2017 = vmatpush3.bf16.msra.mxu1 %v2694_v53 }
 0x157   :  { %v1459_v24 = vpack.c.bf16 %v1298_v22, %v1297_v18 }
 0x159   :  { %v2153_v25 = vpop.f32.mrb[60].mxu0  ;;  %2018 = vmatprep.subr.bf16.mxu1 %v1459_v24 }
 0x15a   :  { %v970_v27 = vpop.f32.mrb[61].mxu0  ;;  %2019 = vmatpush3.bf16.msra.mxu1 %v1451_v14  ;;  %v1303_v21 = vmax.f32 %v2153_v25, 0.0 }
 0x15b   :  { %v2154_v26 = vpop.f32.mrb[62].mxu0  ;;  %2020 = vmatprep.subr.bf16.mxu1 %v1460_v23  ;;  %v1301_v34 = vmax.f32 %v970_v27, 0.0 }
 0x15c   :  { %v1304_v28 = vmax.f32 %v2154_v26, 0.0  ;;  %v973_v56 = vpop.f32.mrb[63].mxu0 }
 0x15d   :  { %v1302_v35 = vmax.f32 %v973_v56, 0.0 }
 0x15e   :  { %v1462_v50 = vpack.c.bf16 %v1304_v28, %v1303_v21  ;;  %2021 = vmatpush3.bf16.msra.mxu1 %v2702_v12 }
 0x15f   :  { %v1461_v53 = vpack.c.bf16 %v1302_v35, %v1301_v34 }
 0x161   :  { %v2157_v14 = vpop.f32.mrb[64].mxu0  ;;  %2022 = vmatprep.subr.bf16.mxu1 %v1461_v53 }
 0x162   :  { %v986_v43 = vpop.f32.mrb[65].mxu0  ;;  %2023 = vmatpush3.bf16.msra.mxu1 %v1453_v42  ;;  %v1307_v46 = vmax.f32 %v2157_v14, 0.0 }
 0x163   :  { %v2158_v45 = vpop.f32.mrb[66].mxu0  ;;  %2024 = vmatprep.subr.bf16.mxu1 %v1462_v50  ;;  %v1305_v12 = vmax.f32 %v986_v43, 0.0 }
 0x164   :  { %v1308_v47 = vmax.f32 %v2158_v45, 0.0  ;;  %v989_v31 = vpop.f32.mrb[67].mxu0 }
 0x165   :  { %v1306_v49 = vmax.f32 %v989_v31, 0.0 }
 0x166   :  { %v1464_v52 = vpack.c.bf16 %v1308_v47, %v1307_v46  ;;  %2025 = vmatpush3.bf16.msra.mxu1 %v2708_v38 }
 0x167   :  { %v1463_v54 = vpack.c.bf16 %v1306_v49, %v1305_v12 }
 0x169   :  { %v2161_v55 = vpop.f32.mrb[68].mxu0  ;;  %1903 = vmatmul.mubr.msk.bf16.vlgmr.msra.gmra.mrb[32].mxu1 %vm1902_vm4, %v2325_v10 }
 0x16a   :  { %v1002_v57 = vpop.f32.mrb[69].mxu0  ;;  %1905 = vmatprep.mubr.msk.bf16.mxu1 %vm1904_vm5, %v2325_v10  ;;  %v1311_v59 = vmax.f32 %v2161_v55, 0.0 }
 0x16b   :  { %v2162_v42 = vpop.f32.mrb[70].mxu0  ;;  %v1309_v62 = vmax.f32 %v1002_v57, 0.0 }
 0x16c   :  { %v1312_v30 = vmax.f32 %v2162_v42, 0.0  ;;  %v1005_v60 = vpop.f32.mrb[71].mxu0 }
 0x16d   :  { %v1310_v63 = vmax.f32 %v1005_v60, 0.0 }
 0x16e   :  { %v1466_v0 = vpack.c.bf16 %v1312_v30, %v1311_v59 }
 0x16f   :  { %v1465_v2 = vpack.c.bf16 %v1310_v63, %v1309_v62 }
 0x171   :  { %v2165_v41 = vpop.f32.mrb[72].mxu0 }
 0x172   :  { %v1018_v5 = vpop.f32.mrb[73].mxu0  ;;  %v1315_v6 = vmax.f32 %v2165_v41, 0.0 }
 0x173   :  { %v2166_v38 = vpop.f32.mrb[74].mxu0  ;;  %v1313_v40 = vmax.f32 %v1018_v5, 0.0 }
 0x174   :  { %v1316_v7 = vmax.f32 %v2166_v38, 0.0  ;;  %v1021_v11 = vpop.f32.mrb[75].mxu0 }
 0x175   :  { %v1314_v15 = vmax.f32 %v1021_v11, 0.0 }
 0x176   :  { %v2724_v29 = vpack.c.bf16 %v1316_v7, %v1315_v6 }
 0x177   :  { %v1467_v16 = vpack.c.bf16 %v1314_v15, %v1313_v40 }
 0x179   :  { %v2169_v18 = vpop.f32.mrb[76].mxu0 }
 0x17a   :  { %v1034_v22 = vpop.f32.mrb[77].mxu0  ;;  %v1319_v24 = vmax.f32 %v2169_v18, 0.0 }
 0x17b   :  { %v2170_v23 = vpop.f32.mrb[78].mxu0  ;;  %v1317_v26 = vmax.f32 %v1034_v22, 0.0 }
 0x17c   :  { %v1320_v25 = vmax.f32 %v2170_v23, 0.0  ;;  %v1037_v27 = vpop.f32.mrb[79].mxu0 }
 0x17d   :  { %v1318_v21 = vmax.f32 %v1037_v27, 0.0 }
 0x17e   :  { %v2726_v28 = vpack.c.bf16 %v1320_v25, %v1319_v24 }
 0x17f   :  { %v1469_v56 = vpack.c.bf16 %v1318_v21, %v1317_v26  ;;  %v1377_v26 = vadd.s32 896, %v2604_v4 }
 0x181   :  { %v2173_v33 = vpop.f32.mrb[80].mxu0  ;;  %vm1388_vm8 = vcmp.ge.s32.totalorder %v1377_v26, %v2610_v8  ;;  %vm1398_vm9 = vcmp.lt.s32.totalorder %v1377_v26, %v2612_v9 }
 0x182   :  { %v1050_v34 = vpop.f32.mrb[81].mxu0  ;;  %v1323_v20 = vmax.f32 %v2173_v33, 0.0  ;;  %vm1406_vm11 = vmand %vm1388_vm8, %vm1398_vm9 }
 0x183   :  { %v2174_v35 = vpop.f32.mrb[82].mxu0  ;;  %v1321_v14 = vmax.f32 %v1050_v34, 0.0  ;;  %vm1908_vm13 = vmpackc.low %vm1406_vm11, %vm1406_vm11 }
 0x184   :  { %v1324_v50 = vmax.f32 %v2174_v35, 0.0  ;;  %v1053_v53 = vpop.f32.mrb[83].mxu0 }
 0x185   :  { %v1322_v43 = vmax.f32 %v1053_v53, 0.0 }
 0x186   :  { %v1472_v45 = vpack.c.bf16 %v1324_v50, %v1323_v20 }
 0x187   :  { %v1471_v46 = vpack.c.bf16 %v1322_v43, %v1321_v14 }
 0x189   :  { %v2177_v47 = vpop.f32.mrb[84].mxu0  ;;  %2032 = vmatprep.subr.bf16.mxu1 %v1471_v46 }
 0x18a   :  { %v1066_v31 = vpop.f32.mrb[85].mxu0  ;;  %2033 = vmatpush3.bf16.msra.mxu1 %v1463_v54  ;;  %v1327_v49 = vmax.f32 %v2177_v47, 0.0 }
 0x18b   :  { %v2178_v12 = vpop.f32.mrb[86].mxu0  ;;  %2034 = vmatprep.subr.bf16.mxu1 %v1472_v45  ;;  %v1325_v42 = vmax.f32 %v1066_v31, 0.0 }
 0x18c   :  { %v1328_v55 = vmax.f32 %v2178_v12, 0.0  ;;  %v1069_v57 = vpop.f32.mrb[87].mxu0 }
 0x18d   :  { %v1326_v59 = vmax.f32 %v1069_v57, 0.0 }
 0x18e   :  { %v1474_v30 = vpack.c.bf16 %v1328_v55, %v1327_v49  ;;  %2035 = vmatpush3.bf16.msra.mxu1 %v1464_v52 }
 0x18f   :  { %v1473_v60 = vpack.c.bf16 %v1326_v59, %v1325_v42 }
 0x191   :  { %v2181_v62 = vpop.f32.mrb[88].mxu0  ;;  %2036 = vmatprep.subr.bf16.mxu1 %v1473_v60 }
 0x192   :  { %v1082_v63 = vpop.f32.mrb[89].mxu0  ;;  %2037 = vmatpush3.bf16.msra.mxu1 %v1465_v2  ;;  %v1331_v5 = vmax.f32 %v2181_v62, 0.0  ;;  %v1374_v2 = vadd.s32 512, %v2604_v4 }
 0x193   :  { %v2182_v41 = vpop.f32.mrb[90].mxu0  ;;  %2038 = vmatprep.subr.bf16.mxu1 %v1474_v30  ;;  %v1329_v54 = vmax.f32 %v1082_v63, 0.0 }
 0x194   :  { %v1332_v38 = vmax.f32 %v2182_v41, 0.0  ;;  %v1085_v6 = vpop.f32.mrb[91].mxu0  ;;  %vm1385_vm6 = vcmp.ge.s32.totalorder %v1374_v2, %v2610_v8  ;;  %vm1395_vm7 = vcmp.lt.s32.totalorder %v1374_v2, %v2612_v9 }
 0x195   :  { %v1330_v7 = vmax.f32 %v1085_v6, 0.0  ;;  %vm1403_vm10 = vmand %vm1385_vm6, %vm1395_vm7 }
 0x196   :  { %v1476_v11 = vpack.c.bf16 %v1332_v38, %v1331_v5  ;;  %2039 = vmatpush3.bf16.msra.mxu1 %v1466_v0  ;;  %vm1906_vm12 = vmpackc.low %vm1403_vm10, %vm1403_vm10  ;;  %v1912_v5 = vld [vmem:[%s2788_s2] ss:$0 sm:$0xff] }
 0x197   :  { %v1475_v40 = vpack.c.bf16 %v1330_v7, %v1329_v54 }
 0x199   :  { %v2185_v15 = vpop.f32.mrb[92].mxu0  ;;  %2040 = vmatprep.subr.bf16.mxu1 %v1475_v40 }
 0x19a   :  { %v1098_v18 = vpop.f32.mrb[93].mxu0  ;;  %2041 = vmatpush3.bf16.msra.mxu1 %v1467_v16  ;;  %v1335_v22 = vmax.f32 %v2185_v15, 0.0 }
 0x19b   :  { %v2186_v52 = vpop.f32.mrb[94].mxu0  ;;  %2042 = vmatprep.subr.bf16.mxu1 %v1476_v11  ;;  %v1333_v25 = vmax.f32 %v1098_v18, 0.0 }
 0x19c   :  { %v1336_v23 = vmax.f32 %v2186_v52, 0.0  ;;  %v1101_v24 = vpop.f32.mrb[95].mxu0 }
 0x19d   :  { %v1334_v27 = vmax.f32 %v1101_v24, 0.0 }
 0x19e   :  { %v1478_v21 = vpack.c.bf16 %v1336_v23, %v1335_v22  ;;  %2043 = vmatpush3.bf16.msra.mxu1 %v2724_v29 }
 0x19f   :  { %v1477_v0 = vpack.c.bf16 %v1334_v27, %v1333_v25 }
 0x1a1   :  { %v2189_v16 = vpop.f32.mrb[96].mxu0  ;;  %2044 = vmatprep.subr.bf16.mxu1 %v1477_v0 }
 0x1a2   :  { %v1339_v33 = vmax.f32 %v2189_v16, 0.0  ;;  %v1114_v34 = vpop.f32.mrb[97].mxu0  ;;  %2045 = vmatpush3.bf16.msra.mxu1 %v1469_v56 }
 0x1a3   :  { %v2190_v35 = vpop.f32.mrb[98].mxu0  ;;  %2046 = vmatprep.subr.bf16.mxu1 %v1478_v21  ;;  %v1337_v29 = vmax.f32 %v1114_v34, 0.0 }
 0x1a4   :  { %v1340_v20 = vmax.f32 %v2190_v35, 0.0  ;;  %v1117_v50 = vpop.f32.mrb[99].mxu0 }
 0x1a5   :  { %v1338_v53 = vmax.f32 %v1117_v50, 0.0 }
 0x1a6   :  { %v1480_v14 = vpack.c.bf16 %v1340_v20, %v1339_v33  ;;  %2047 = vmatpush3.bf16.msra.mxu1 %v2726_v28 }
 0x1a7   :  { %v1479_v43 = vpack.c.bf16 %v1338_v53, %v1337_v29  ;;  %2054 = vmatprep.subr.bf16.mxu1 %v2675_v51  ;;  %v1376_v51 = vadd.s32 768, %v2604_v4 }
 0x1a9   :  { %1907 = vmatmul.mubr.msk.bf16.vlgmr.msra.gmra.mrb[36].mxu1 %vm1906_vm12, %v2325_v10  ;;  %vm1387_vm14 = vcmp.ge.s32.totalorder %v1376_v51, %v2610_v8  ;;  %vm1397_vm15 = vcmp.lt.s32.totalorder %v1376_v51, %v2612_v9  ;;  %v2317_v8 = vld [vmem:[%s2786_s1 + $0x14] sm:$0xff]   ;;  %v2326_v9 = vmov 0.0  }
 0x1aa   :  { %2055 = vmatpush3.bf16.msra.mxu1 %v1479_v43  ;;  %1909 = vmatprep.mubr.msk.bf16.mxu1 %vm1908_vm13, %v2325_v10  ;;  %vm1405_vm0 = vmand %vm1387_vm14, %vm1397_vm15 }
 0x1ab   :  { %2056 = vmatprep.subr.bf16.mxu1 %v2669_v19  ;;  %vm1910_vm1 = vmpackc.low %vm1405_vm0, %vm1405_vm0  ;;  %v2321_v19 = vld [vmem:[%s2786_s1 + $0x34] sm:$0xff]  }
 0x1ae   :  { %2057 = vmatpush3.bf16.msra.mxu1 %v1480_v14 }
 0x1af   :  { %2058 = vmatprep.subr.bf16.mxu1 %v2692_v48  ;;  %v2323_v48 = vld [vmem:[%s2786_s1 + $0x44] sm:$0xff]  }
 0x1b2   :  { %2059 = vmatpush3.bf16.msra.mxu1 %v2639_v17 }
 0x1b3   :  { %2060 = vmatprep.subr.bf16.mxu1 %v2690_v44  ;;  %v2322_v44 = vld [vmem:[%s2786_s1 + $0x3c] sm:$0xff]  }
 0x1b6   :  { %2061 = vmatpush3.bf16.msra.mxu1 %v2637_v13 }
 0x1b7   :  { %2062 = vmatprep.subr.bf16.mxu1 %v2700_v3 }
 0x1ba   :  { %2063 = vmatpush3.bf16.msra.mxu1 %v2645_v39 }
 0x1bb   :  { %2064 = vmatprep.subr.bf16.mxu1 %v2698_v1  ;;  %v2324_v1 = vld [vmem:[%s2786_s1 + $0x4c] sm:$0xff]  }
 0x1be   :  { %2065 = vmatpush3.bf16.msra.mxu1 %v2643_v36 }
 0x1bf   :  { %2066 = vmatprep.subr.bf16.mxu1 %v2706_v37 }
 0x1c2   :  { %2067 = vmatpush3.bf16.msra.mxu1 %v2651_v61  ;;  %v2318_v61 = vld [vmem:[%s2786_s1 + $0x1c] sm:$0xff]  }
 0x1c3   :  { %2068 = vmatprep.subr.bf16.mxu1 %v2704_v32 }
 0x1c6   :  { %2069 = vmatpush3.bf16.msra.mxu1 %v2649_v58  ;;  %v2320_v58 = vld [vmem:[%s2786_s1 + $0x2c] sm:$0xff]  }
 0x1c7   :  { %2219 = vmatprep.subr.bf16.mxu1 %v2326_v9 }
 0x1c9   :  { %1911 = vmatmul.mubr.msk.bf16.vlgmr.msra.gmra.mrb[40].mxu1 %vm1910_vm1, %v2325_v10  ;;  %v2319_v10 = vld [vmem:[%s2786_s1 + $0x24] sm:$0xff]  }
 0x1ca   :  { %2220 = vmatpush3.bf16.msra.mxu1 %v2317_v8  ;;  %2235 = vmatprep.mubr.msk.bf16.mxu1 %vm2327_vm2, %v2326_v9 }
 0x1cb   :  { %2221 = vmatprep.subr.bf16.mxu1 %v2326_v9 }
 0x1ce   :  { %2222 = vmatpush3.bf16.msra.mxu1 %v2318_v61 }
 0x1cf   :  { %2223 = vmatprep.subr.bf16.mxu1 %v2326_v9 }
 0x1d2   :  { %2224 = vmatpush3.bf16.msra.mxu1 %v2319_v10 }
 0x1d3   :  { %2225 = vmatprep.subr.bf16.mxu1 %v2326_v9 }
 0x1d6   :  { %2226 = vmatpush3.bf16.msra.mxu1 %v2320_v58 }
 0x1d7   :  { %2227 = vmatprep.subr.bf16.mxu1 %v2326_v9 }
 0x1da   :  { %2228 = vmatpush3.bf16.msra.mxu1 %v2321_v19 }
 0x1db   :  { %2229 = vmatprep.subr.bf16.mxu1 %v2326_v9 }
 0x1de   :  { %2230 = vmatpush3.bf16.msra.mxu1 %v2322_v44 }
 0x1df   :  { %2231 = vmatprep.subr.bf16.mxu1 %v2326_v9 }
 0x1e2   :  { %2232 = vmatpush3.bf16.msra.mxu1 %v2323_v48 }
 0x1e3   :  { %2233 = vmatprep.subr.bf16.mxu1 %v2326_v9 }
 0x1e6   :  { %2234 = vmatpush3.bf16.msra.mxu1 %v2324_v1 }
 0x1fc   :  { %v2004_v13 = vpop.f32.mrb[28].mxu1 }
 0x1fd   :  { %v2005_v4 = vpop.f32.mrb[29].mxu1 }
 0x1fe   :  { %v2006_v17 = vadd.f32 %v2005_v4, %v2004_v13  ;;  %v2007_v36 = vpop.f32.mrb[30].mxu1 }
 0x1ff   :  { %v2008_v39 = vpop.f32.mrb[31].mxu1 }
 0x23c   :  { %v2026_v3 = vpop.f32.mrb[32].mxu1 }
 0x23d   :  { %v2027_v32 = vpop.f32.mrb[33].mxu1 }
 0x23e   :  { %v2028_v37 = vadd.f32 %v2027_v32, %v2026_v3  ;;  %v2029_v28 = vpop.f32.mrb[34].mxu1 }
 0x23f   :  { %v2030_v56 = vpop.f32.mrb[35].mxu1 }
 0x240   :  { %v1570_v45 = vadd.f32 %v2028_v37, %v2006_v17 }
 0x27c   :  { %v2048_v46 = vpop.f32.mrb[36].mxu1 }
 0x27d   :  { %v2049_v47 = vpop.f32.mrb[37].mxu1 }
 0x27e   :  { %v2050_v31 = vadd.f32 %v2049_v47, %v2048_v46  ;;  %v2051_v12 = vpop.f32.mrb[38].mxu1 }
 0x27f   :  { %v2052_v49 = vpop.f32.mrb[39].mxu1 }
 0x280   :  { %v1610_v55 = vadd.f32 %v2050_v31, %v1570_v45 }
 0x29c   :  { %v2070_v57 = vpop.f32.mrb[40].mxu1 }
 0x29d   :  { %v2071_v42 = vpop.f32.mrb[41].mxu1 }
 0x29e   :  { %v2072_v59 = vadd.f32 %v2071_v42, %v2070_v57  ;;  %v2073_v30 = vpop.f32.mrb[42].mxu1 }
 0x29f   :  { %v2074_v60 = vpop.f32.mrb[43].mxu1 }
 0x2a0   :  { %v1650_v62 = vadd.f32 %v2072_v59, %v1610_v55 }
 0x2a2   :  { %v1655_v63 = vmul.f32 0.00390625, %v1650_v62 }
 0x2a4   :  { %v1656_v41 = vpack.c.bf16 %v1655_v63, %v1655_v63 }
 0x2a6   :  { %2236 = vmatmul.mubr.bf16.vlgmr.msra.gmra.mrb[44].mxu1 %v1656_v41 }
 0x379   :  { %v1746_v38 = vpop.f32.mrb[44].mxu1 }
 0x37a   :  { %v1747_v6 = vadd.f32 %v1912_v5, %v1746_v38  ;;  %v2237_v54 = vpop.f32.mrb[45].mxu1 }
 0x37b   :  { %v1749_v7 = vpop.f32.mrb[46].mxu1 }
 0x37c   :  { %1752 = vst [vmem:[%s2789_s3] sm:$0xf] %v1747_v6  ;;  %v2238_v11 = vpop.f32.mrb[47].mxu1 }

</bundles_post_ra>
